<compile_context>
chip_gen: v7x
topology: tpu7x:2x2x1
jax: 0.10.0
libtpu: 0.0.40
codegen_flags: <defaults>
</compile_context>

<pallas_src>
import functools

import jax
import jax.numpy as jnp
from jax.experimental import pallas as pl
from jax.experimental.pallas import tpu as pltpu


# ----------------------------- math helpers ---------------------------------
_INV_SQRT2 = 0.7071067811865476


def _erf_approx(x):
    # Abramowitz & Stegun 7.1.26 rational approximation, |err| < 1.5e-7.
    # Matches torch.nn.GELU() (exact erf) to well inside the 1e-3 tolerance;
    # the exp() lowers to the otherwise-idle EUP slot.
    a1, a2, a3, a4, a5 = (0.254829592, -0.284496736, 1.421413741,
                          -1.453152027, 1.061405429)
    p = 0.3275911
    ax = jnp.abs(x)
    t = 1.0 / (1.0 + p * ax)
    poly = ((((a5 * t + a4) * t + a3) * t + a2) * t + a1) * t
    y = 1.0 - poly * jnp.exp(-ax * ax)
    return jnp.where(x >= 0.0, y, -y)


def _gelu(x):
    # Exact (erf-based) GELU, matching torch.nn.GELU() default.
    return 0.5 * x * (1.0 + _erf_approx(x * _INV_SQRT2))


# ------------------------------- kernel --------------------------------------
def mbconv_kernel(x_ref, mask_ref, w1t_ref, b1_ref, wd_ref, bd_ref,
                  wse1_ref, bse1_ref, wse2_ref, bse2_ref,
                  w2t_ref, b2_ref, o_ref, *, H, W):
    HW = H * W
    x = x_ref[0]                                           # (C, HW), lane-dense

    # --- 1x1 expansion conv + GELU (MXU: (Ch, C) @ (C, HW)) -------------------
    h1 = jnp.dot(w1t_ref[...], x, preferred_element_type=jnp.float32)
    h1 = _gelu(h1 + b1_ref[...])                           # (Ch, HW)

    # --- depthwise 3x3 conv (pad=1, groups=Ch) + GELU -------------------------
    # Shift the flattened spatial axis with XLU lane rolls; lanes that would
    # read across the image border are zeroed by precomputed masks, so no
    # padded scratch buffer is needed.
    wd = wd_ref[...]                                       # (Ch, 9)
    masks = mask_ref[...]                                  # (9, HW)
    acc = jnp.zeros(h1.shape, jnp.float32)
    t = 0
    for dh in (-1, 0, 1):
        for dw in (-1, 0, 1):
            delta = dh * W + dw                            # input offset for this tap
            if delta == 0:
                shifted = h1
            else:
                # shifted[p] = h1[(p + delta) % HW]; wrapped lanes are masked.
                shifted = pltpu.roll(h1, shift=(-delta) % HW, axis=1)
            acc = acc + wd[:, t:t + 1] * (masks[t:t + 1, :] * shifted)
            t += 1
    h2 = _gelu(acc + bd_ref[...])                          # (Ch, HW)

    # --- squeeze-excitation (VPU multiply + XLU reduce; no M=1 MXU matmuls) ---
    pooled = jnp.mean(h2, axis=1, keepdims=True)           # (Ch, 1) lane reduce
    s = jnp.sum(wse1_ref[...] * pooled, axis=0, keepdims=True) + bse1_ref[...]
    s = _gelu(s)                                           # (1, Cse)
    g = jnp.sum(wse2_ref[...] * s, axis=1, keepdims=True) + bse2_ref[...]
    g = jax.nn.sigmoid(g)                                  # (Ch, 1)
    h3 = h2 * g                                            # (Ch, HW)

    # --- 1x1 projection conv (MXU: (C, Ch) @ (Ch, HW)), lane-dense store ------
    out = jnp.dot(w2t_ref[...], h3, preferred_element_type=jnp.float32)
    o_ref[0] = (out + b2_ref[...]).astype(o_ref.dtype)


# ------------------------------- wrapper --------------------------------------
def _dw_masks(H, W):
    """(9, H*W) validity masks for the 3x3 taps of a padding=1 depthwise conv."""
    hh = jnp.arange(H * W, dtype=jnp.int32) // W
    ww = jnp.arange(H * W, dtype=jnp.int32) % W
    rows = []
    for dh in (-1, 0, 1):
        for dw in (-1, 0, 1):
            valid = ((hh + dh >= 0) & (hh + dh < H) &
                     (ww + dw >= 0) & (ww + dw < W))
            rows.append(valid.astype(jnp.float32))
    return jnp.stack(rows)                                 # (9, HW)


def mbconv_forward(x_nchw, params):
    B, C, H, W = x_nchw.shape
    HW = H * W
    Ch = params["w1"].shape[1]

    # Pure reshape, no transpose: NCHW is already channel-major, so H*W lands
    # on the lane axis for the whole kernel and for the output store.
    x = x_nchw.reshape(B, C, HW)

    # Tiny channel-major parameter views (built once, outside the kernel).
    w1t = params["w1"].T                                   # (Ch, C)
    b1 = params["b1"].reshape(Ch, 1)
    wd = params["wd"].T                                    # (Ch, 9)
    bd = params["bd"].reshape(Ch, 1)
    wse1 = params["wse1"]                                  # (Ch, Cse)
    bse1 = params["bse1"]                                  # (1, Cse)
    wse2 = params["wse2"].T                                # (Ch, Cse)
    bse2 = params["bse2"].reshape(Ch, 1)
    w2t = params["w2"].T                                   # (C, Ch)
    b2 = params["b2"].reshape(C, 1)
    masks = _dw_masks(H, W)                                # (9, HW)

    def full_spec(arr):
        zeros = (0,) * arr.ndim
        return pl.BlockSpec(arr.shape, lambda b: zeros)

    weights = (masks, w1t, b1, wd, bd, wse1, bse1, wse2, bse2, w2t, b2)

    kernel = functools.partial(mbconv_kernel, H=H, W=W)
    out = pl.pallas_call(
        kernel,
        out_shape=jax.ShapeDtypeStruct((B, C, HW), x.dtype),
        grid_spec=pltpu.PrefetchScalarGridSpec(
            num_scalar_prefetch=0,
            grid=(B,),
            in_specs=[pl.BlockSpec((1, C, HW), lambda b: (b, 0, 0))]
                     + [full_spec(w) for w in weights],
            out_specs=pl.BlockSpec((1, C, HW), lambda b: (b, 0, 0)),
        ),
        # Images are independent: "parallel" lets the v7x runtime shard grid
        # steps across both TensorCores (no effect on single-core v5e/v6e).
        compiler_params=pltpu.CompilerParams(
            dimension_semantics=("parallel",)),
    )(x, *weights)

    return out.reshape(B, C, H, W)                         # already NCHW


# --------------------------- params & reference --------------------------------
def init_params(key, dim, growth_rate=2.0, shrinkage_rate=0.25):
    hidden = int(dim * growth_rate)
    se_hidden = int(hidden * shrinkage_rate)
    ks = jax.random.split(key, 10)

    def w(k, shape, fan_in):
        return (jax.random.normal(k, shape, jnp.float32) /
                jnp.sqrt(jnp.float32(fan_in)))

    return {
        "w1":   w(ks[0], (dim, hidden), dim),        # Conv2d(dim, hidden, 1)
        "b1":   w(ks[1], (1, hidden), dim),
        "wd":   w(ks[2], (9, hidden), 9),            # depthwise 3x3, (kh*3+kw, c)
        "bd":   w(ks[3], (1, hidden), 9),
        "wse1": w(ks[4], (hidden, se_hidden), hidden),
        "bse1": w(ks[5], (1, se_hidden), hidden),
        "wse2": w(ks[6], (se_hidden, hidden), se_hidden),
        "bse2": w(ks[7], (1, hidden), se_hidden),
        "w2":   w(ks[8], (hidden, dim), hidden),     # Conv2d(hidden, dim, 1)
        "b2":   w(ks[9], (1, dim), hidden),
    }


def mbconv_reference(x_nchw, params):
    # Plain-JAX reference (exact erf GELU) for sanity checking.
    B, C, H, W = x_nchw.shape
    x = jnp.transpose(x_nchw, (0, 2, 3, 1))
    gelu = lambda v: 0.5 * v * (1.0 + jax.scipy.special.erf(v * _INV_SQRT2))
    h1 = gelu(jnp.einsum("bhwc,cd->bhwd", x, params["w1"]) + params["b1"][0])
    hp = jnp.pad(h1, ((0, 0), (1, 1), (1, 1), (0, 0)))
    acc = jnp.broadcast_to(params["bd"][0], h1.shape)
    for kh in range(3):
        for kw in range(3):
            acc = acc + hp[:, kh:kh + H, kw:kw + W, :] * params["wd"][3 * kh + kw]
    h2 = gelu(acc)
    pooled = jnp.mean(h2, axis=(1, 2))
    s = gelu(pooled @ params["wse1"] + params["bse1"][0])
    g = jax.nn.sigmoid(s @ params["wse2"] + params["bse2"][0])
    h3 = h2 * g[:, None, None, :]
    out = jnp.einsum("bhwd,dc->bhwc", h3, params["w2"]) + params["b2"][0]
    return jnp.transpose(out, (0, 3, 1, 2))


# --------------------------------- main ----------------------------------------
if __name__ == "__main__":
    key = jax.random.PRNGKey(0)
    kx, kp = jax.random.split(key)

    dim, B, H, W = 4, 2, 16, 16                      # hidden=8, SE hidden=2
    x = jax.random.normal(kx, (B, dim, H, W), jnp.float32)
    params = init_params(kp, dim)

    y = mbconv_forward(x, params)
    jax.block_until_ready(y)

    y_ref = mbconv_reference(x, params)
    assert y.shape == (B, dim, H, W)
    max_err = float(jnp.max(jnp.abs(y - y_ref)))
    if max_err > 1e-3:
        raise ValueError(f"kernel/reference mismatch, max abs err = {max_err}")

    print("KERNEL_OK")
</pallas_src>

<mosaic_0001>
module attributes {stable_mosaic.version = 11 : i64} {
  func.func @mbconv_kernel(%arg0: i32, %arg1: memref<1x4x256xf32, #tpu.memory_space<vmem>>, %arg2: memref<9x256xf32, #tpu.memory_space<vmem>>, %arg3: memref<8x4xf32, #tpu.memory_space<vmem>>, %arg4: memref<8x1xf32, #tpu.memory_space<vmem>>, %arg5: memref<8x9xf32, #tpu.memory_space<vmem>>, %arg6: memref<8x1xf32, #tpu.memory_space<vmem>>, %arg7: memref<8x2xf32, #tpu.memory_space<vmem>>, %arg8: memref<1x2xf32, #tpu.memory_space<vmem>>, %arg9: memref<8x2xf32, #tpu.memory_space<vmem>>, %arg10: memref<8x1xf32, #tpu.memory_space<vmem>>, %arg11: memref<4x8xf32, #tpu.memory_space<vmem>>, %arg12: memref<4x1xf32, #tpu.memory_space<vmem>>, %arg13: memref<1x4x256xf32, #tpu.memory_space<vmem>>) attributes {dimension_semantics = [#tpu.dimension_semantics<parallel>], iteration_bounds = array<i64: 2>, scalar_prefetch = 0 : i64, scratch_operands = 0 : i64, tpu.core_type = #tpu.core_type<tc>, window_params = [{transform_indices = @transform_0, window_bounds = array<i64: 1, 4, 256>}, {pipeline_mode = #tpu.pipeline_mode<synchronous>, transform_indices = @transform_1, window_bounds = array<i64: 9, 256>}, {pipeline_mode = #tpu.pipeline_mode<synchronous>, transform_indices = @transform_2, window_bounds = array<i64: 8, 4>}, {pipeline_mode = #tpu.pipeline_mode<synchronous>, transform_indices = @transform_3, window_bounds = array<i64: 8, 1>}, {pipeline_mode = #tpu.pipeline_mode<synchronous>, transform_indices = @transform_4, window_bounds = array<i64: 8, 9>}, {pipeline_mode = #tpu.pipeline_mode<synchronous>, transform_indices = @transform_5, window_bounds = array<i64: 8, 1>}, {pipeline_mode = #tpu.pipeline_mode<synchronous>, transform_indices = @transform_6, window_bounds = array<i64: 8, 2>}, {pipeline_mode = #tpu.pipeline_mode<synchronous>, transform_indices = @transform_7, window_bounds = array<i64: 1, 2>}, {pipeline_mode = #tpu.pipeline_mode<synchronous>, transform_indices = @transform_8, window_bounds = array<i64: 8, 2>}, {pipeline_mode = #tpu.pipeline_mode<synchronous>, transform_indices = @transform_9, window_bounds = array<i64: 8, 1>}, {pipeline_mode = #tpu.pipeline_mode<synchronous>, transform_indices = @transform_10, window_bounds = array<i64: 4, 8>}, {pipeline_mode = #tpu.pipeline_mode<synchronous>, transform_indices = @transform_11, window_bounds = array<i64: 4, 1>}, {transform_indices = @transform_12, window_bounds = array<i64: 1, 4, 256>}]} {
    %c0 = arith.constant 0 : index
    %c0_0 = arith.constant 0 : index
    %c0_1 = arith.constant 0 : index
    %0 = vector.load %arg1[%c0, %c0_0, %c0_1] : memref<1x4x256xf32, #tpu.memory_space<vmem>>, vector<1x4x256xf32>
    %1 = vector.shape_cast %0 : vector<1x4x256xf32> to vector<4x256xf32>
    %c0_2 = arith.constant 0 : index
    %c0_3 = arith.constant 0 : index
    %2 = vector.load %arg3[%c0_2, %c0_3] : memref<8x4xf32, #tpu.memory_space<vmem>>, vector<8x4xf32>
    %cst = arith.constant dense<0.000000e+00> : vector<8x256xf32>
    %3 = tpu.matmul %2, %1, %cst {dimension_numbers = #tpu.dot_dimension_numbers<[1], [0], [0], [1], [0, 0, 1, 1], [], []>} : vector<8x4xf32>, vector<4x256xf32>, vector<8x256xf32> -> vector<8x256xf32>
    %c0_4 = arith.constant 0 : index
    %c0_5 = arith.constant 0 : index
    %4 = vector.load %arg4[%c0_4, %c0_5] : memref<8x1xf32, #tpu.memory_space<vmem>>, vector<8x1xf32>
    %5 = vector.broadcast %4 : vector<8x1xf32> to vector<8x256xf32>
    %6 = arith.addf %3, %5 : vector<8x256xf32>
    %cst_6 = arith.constant 5.000000e-01 : f32
    %7 = vector.broadcast %cst_6 : f32 to vector<8x256xf32>
    %8 = arith.mulf %7, %6 : vector<8x256xf32>
    %cst_7 = arith.constant 0.707106769 : f32
    %9 = vector.broadcast %cst_7 : f32 to vector<8x256xf32>
    %10 = arith.mulf %6, %9 : vector<8x256xf32>
    %11 = math.absf %10 : vector<8x256xf32>
    %cst_8 = arith.constant 0.327591091 : f32
    %12 = vector.broadcast %cst_8 : f32 to vector<8x256xf32>
    %13 = arith.mulf %12, %11 : vector<8x256xf32>
    %cst_9 = arith.constant 1.000000e+00 : f32
    %14 = vector.broadcast %cst_9 : f32 to vector<8x256xf32>
    %15 = arith.addf %14, %13 : vector<8x256xf32>
    %cst_10 = arith.constant 1.000000e+00 : f32
    %16 = vector.broadcast %cst_10 : f32 to vector<8x256xf32>
    %17 = arith.divf %16, %15 : vector<8x256xf32>
    %cst_11 = arith.constant 1.06140542 : f32
    %18 = vector.broadcast %cst_11 : f32 to vector<8x256xf32>
    %19 = arith.mulf %18, %17 : vector<8x256xf32>
    %cst_12 = arith.constant -1.45315206 : f32
    %20 = vector.broadcast %cst_12 : f32 to vector<8x256xf32>
    %21 = arith.addf %19, %20 : vector<8x256xf32>
    %22 = arith.mulf %21, %17 : vector<8x256xf32>
    %cst_13 = arith.constant 1.42141378 : f32
    %23 = vector.broadcast %cst_13 : f32 to vector<8x256xf32>
    %24 = arith.addf %22, %23 : vector<8x256xf32>
    %25 = arith.mulf %24, %17 : vector<8x256xf32>
    %cst_14 = arith.constant -0.284496725 : f32
    %26 = vector.broadcast %cst_14 : f32 to vector<8x256xf32>
    %27 = arith.addf %25, %26 : vector<8x256xf32>
    %28 = arith.mulf %27, %17 : vector<8x256xf32>
    %cst_15 = arith.constant 0.254829586 : f32
    %29 = vector.broadcast %cst_15 : f32 to vector<8x256xf32>
    %30 = arith.addf %28, %29 : vector<8x256xf32>
    %31 = arith.mulf %30, %17 : vector<8x256xf32>
    %cst_16 = arith.constant 0.000000e+00 : f32
    %32 = vector.broadcast %cst_16 : f32 to vector<8x256xf32>
    %33 = arith.subf %32, %11 : vector<8x256xf32>
    %34 = arith.mulf %33, %11 : vector<8x256xf32>
    %35 = math.exp %34 : vector<8x256xf32>
    %36 = arith.mulf %31, %35 : vector<8x256xf32>
    %cst_17 = arith.constant 1.000000e+00 : f32
    %37 = vector.broadcast %cst_17 : f32 to vector<8x256xf32>
    %38 = arith.subf %37, %36 : vector<8x256xf32>
    %cst_18 = arith.constant 0.000000e+00 : f32
    %39 = vector.broadcast %cst_18 : f32 to vector<8x256xf32>
    %40 = arith.cmpf oge, %10, %39 : vector<8x256xf32>
    %cst_19 = arith.constant 0.000000e+00 : f32
    %41 = vector.broadcast %cst_19 : f32 to vector<8x256xf32>
    %42 = arith.subf %41, %38 : vector<8x256xf32>
    %43 = arith.select %40, %38, %42 : vector<8x256xi1>, vector<8x256xf32>
    %cst_20 = arith.constant 1.000000e+00 : f32
    %44 = vector.broadcast %cst_20 : f32 to vector<8x256xf32>
    %45 = arith.addf %44, %43 : vector<8x256xf32>
    %46 = arith.mulf %8, %45 : vector<8x256xf32>
    %c0_21 = arith.constant 0 : index
    %c0_22 = arith.constant 0 : index
    %47 = vector.load %arg5[%c0_21, %c0_22] : memref<8x9xf32, #tpu.memory_space<vmem>>, vector<8x9xf32>
    %c0_23 = arith.constant 0 : index
    %c0_24 = arith.constant 0 : index
    %48 = vector.load %arg2[%c0_23, %c0_24] : memref<9x256xf32, #tpu.memory_space<vmem>>, vector<9x256xf32>
    %cst_25 = arith.constant 0.000000e+00 : f32
    %49 = vector.broadcast %cst_25 : f32 to vector<8x256xf32>
    %c17_i32 = arith.constant 17 : i32
    %50 = tpu.dynamic_rotate %46 by %c17_i32 dim 1 : vector<8x256xf32>, i32 -> vector<8x256xf32>
    %51 = vector.extract_strided_slice %47 {offsets = [0, 0], sizes = [8, 1], strides = [1, 1]} : vector<8x9xf32> to vector<8x1xf32>
    %52 = vector.extract_strided_slice %48 {offsets = [0, 0], sizes = [1, 256], strides = [1, 1]} : vector<9x256xf32> to vector<1x256xf32>
    %53 = vector.broadcast %52 : vector<1x256xf32> to vector<8x256xf32>
    %54 = arith.mulf %53, %50 : vector<8x256xf32>
    %55 = vector.broadcast %51 : vector<8x1xf32> to vector<8x256xf32>
    %56 = arith.mulf %55, %54 : vector<8x256xf32>
    %57 = arith.addf %49, %56 : vector<8x256xf32>
    %c16_i32 = arith.constant 16 : i32
    %58 = tpu.dynamic_rotate %46 by %c16_i32 dim 1 : vector<8x256xf32>, i32 -> vector<8x256xf32>
    %59 = vector.extract_strided_slice %47 {offsets = [0, 1], sizes = [8, 1], strides = [1, 1]} : vector<8x9xf32> to vector<8x1xf32>
    %60 = vector.extract_strided_slice %48 {offsets = [1, 0], sizes = [1, 256], strides = [1, 1]} : vector<9x256xf32> to vector<1x256xf32>
    %61 = vector.broadcast %60 : vector<1x256xf32> to vector<8x256xf32>
    %62 = arith.mulf %61, %58 : vector<8x256xf32>
    %63 = vector.broadcast %59 : vector<8x1xf32> to vector<8x256xf32>
    %64 = arith.mulf %63, %62 : vector<8x256xf32>
    %65 = arith.addf %57, %64 : vector<8x256xf32>
    %c15_i32 = arith.constant 15 : i32
    %66 = tpu.dynamic_rotate %46 by %c15_i32 dim 1 : vector<8x256xf32>, i32 -> vector<8x256xf32>
    %67 = vector.extract_strided_slice %47 {offsets = [0, 2], sizes = [8, 1], strides = [1, 1]} : vector<8x9xf32> to vector<8x1xf32>
    %68 = vector.extract_strided_slice %48 {offsets = [2, 0], sizes = [1, 256], strides = [1, 1]} : vector<9x256xf32> to vector<1x256xf32>
    %69 = vector.broadcast %68 : vector<1x256xf32> to vector<8x256xf32>
    %70 = arith.mulf %69, %66 : vector<8x256xf32>
    %71 = vector.broadcast %67 : vector<8x1xf32> to vector<8x256xf32>
    %72 = arith.mulf %71, %70 : vector<8x256xf32>
    %73 = arith.addf %65, %72 : vector<8x256xf32>
    %c1_i32 = arith.constant 1 : i32
    %74 = tpu.dynamic_rotate %46 by %c1_i32 dim 1 : vector<8x256xf32>, i32 -> vector<8x256xf32>
    %75 = vector.extract_strided_slice %47 {offsets = [0, 3], sizes = [8, 1], strides = [1, 1]} : vector<8x9xf32> to vector<8x1xf32>
    %76 = vector.extract_strided_slice %48 {offsets = [3, 0], sizes = [1, 256], strides = [1, 1]} : vector<9x256xf32> to vector<1x256xf32>
    %77 = vector.broadcast %76 : vector<1x256xf32> to vector<8x256xf32>
    %78 = arith.mulf %77, %74 : vector<8x256xf32>
    %79 = vector.broadcast %75 : vector<8x1xf32> to vector<8x256xf32>
    %80 = arith.mulf %79, %78 : vector<8x256xf32>
    %81 = arith.addf %73, %80 : vector<8x256xf32>
    %82 = vector.extract_strided_slice %47 {offsets = [0, 4], sizes = [8, 1], strides = [1, 1]} : vector<8x9xf32> to vector<8x1xf32>
    %83 = vector.extract_strided_slice %48 {offsets = [4, 0], sizes = [1, 256], strides = [1, 1]} : vector<9x256xf32> to vector<1x256xf32>
    %84 = vector.broadcast %83 : vector<1x256xf32> to vector<8x256xf32>
    %85 = arith.mulf %84, %46 : vector<8x256xf32>
    %86 = vector.broadcast %82 : vector<8x1xf32> to vector<8x256xf32>
    %87 = arith.mulf %86, %85 : vector<8x256xf32>
    %88 = arith.addf %81, %87 : vector<8x256xf32>
    %c255_i32 = arith.constant 255 : i32
    %89 = tpu.dynamic_rotate %46 by %c255_i32 dim 1 : vector<8x256xf32>, i32 -> vector<8x256xf32>
    %90 = vector.extract_strided_slice %47 {offsets = [0, 5], sizes = [8, 1], strides = [1, 1]} : vector<8x9xf32> to vector<8x1xf32>
    %91 = vector.extract_strided_slice %48 {offsets = [5, 0], sizes = [1, 256], strides = [1, 1]} : vector<9x256xf32> to vector<1x256xf32>
    %92 = vector.broadcast %91 : vector<1x256xf32> to vector<8x256xf32>
    %93 = arith.mulf %92, %89 : vector<8x256xf32>
    %94 = vector.broadcast %90 : vector<8x1xf32> to vector<8x256xf32>
    %95 = arith.mulf %94, %93 : vector<8x256xf32>
    %96 = arith.addf %88, %95 : vector<8x256xf32>
    %c241_i32 = arith.constant 241 : i32
    %97 = tpu.dynamic_rotate %46 by %c241_i32 dim 1 : vector<8x256xf32>, i32 -> vector<8x256xf32>
    %98 = vector.extract_strided_slice %47 {offsets = [0, 6], sizes = [8, 1], strides = [1, 1]} : vector<8x9xf32> to vector<8x1xf32>
    %99 = vector.extract_strided_slice %48 {offsets = [6, 0], sizes = [1, 256], strides = [1, 1]} : vector<9x256xf32> to vector<1x256xf32>
    %100 = vector.broadcast %99 : vector<1x256xf32> to vector<8x256xf32>
    %101 = arith.mulf %100, %97 : vector<8x256xf32>
    %102 = vector.broadcast %98 : vector<8x1xf32> to vector<8x256xf32>
    %103 = arith.mulf %102, %101 : vector<8x256xf32>
    %104 = arith.addf %96, %103 : vector<8x256xf32>
    %c240_i32 = arith.constant 240 : i32
    %105 = tpu.dynamic_rotate %46 by %c240_i32 dim 1 : vector<8x256xf32>, i32 -> vector<8x256xf32>
    %106 = vector.extract_strided_slice %47 {offsets = [0, 7], sizes = [8, 1], strides = [1, 1]} : vector<8x9xf32> to vector<8x1xf32>
    %107 = vector.extract_strided_slice %48 {offsets = [7, 0], sizes = [1, 256], strides = [1, 1]} : vector<9x256xf32> to vector<1x256xf32>
    %108 = vector.broadcast %107 : vector<1x256xf32> to vector<8x256xf32>
    %109 = arith.mulf %108, %105 : vector<8x256xf32>
    %110 = vector.broadcast %106 : vector<8x1xf32> to vector<8x256xf32>
    %111 = arith.mulf %110, %109 : vector<8x256xf32>
    %112 = arith.addf %104, %111 : vector<8x256xf32>
    %c239_i32 = arith.constant 239 : i32
    %113 = tpu.dynamic_rotate %46 by %c239_i32 dim 1 : vector<8x256xf32>, i32 -> vector<8x256xf32>
    %114 = vector.extract_strided_slice %47 {offsets = [0, 8], sizes = [8, 1], strides = [1, 1]} : vector<8x9xf32> to vector<8x1xf32>
    %115 = vector.extract_strided_slice %48 {offsets = [8, 0], sizes = [1, 256], strides = [1, 1]} : vector<9x256xf32> to vector<1x256xf32>
    %116 = vector.broadcast %115 : vector<1x256xf32> to vector<8x256xf32>
    %117 = arith.mulf %116, %113 : vector<8x256xf32>
    %118 = vector.broadcast %114 : vector<8x1xf32> to vector<8x256xf32>
    %119 = arith.mulf %118, %117 : vector<8x256xf32>
    %120 = arith.addf %112, %119 : vector<8x256xf32>
    %c0_26 = arith.constant 0 : index
    %c0_27 = arith.constant 0 : index
    %121 = vector.load %arg6[%c0_26, %c0_27] : memref<8x1xf32, #tpu.memory_space<vmem>>, vector<8x1xf32>
    %122 = vector.broadcast %121 : vector<8x1xf32> to vector<8x256xf32>
    %123 = arith.addf %120, %122 : vector<8x256xf32>
    %cst_28 = arith.constant 5.000000e-01 : f32
    %124 = vector.broadcast %cst_28 : f32 to vector<8x256xf32>
    %125 = arith.mulf %124, %123 : vector<8x256xf32>
    %cst_29 = arith.constant 0.707106769 : f32
    %126 = vector.broadcast %cst_29 : f32 to vector<8x256xf32>
    %127 = arith.mulf %123, %126 : vector<8x256xf32>
    %128 = math.absf %127 : vector<8x256xf32>
    %cst_30 = arith.constant 0.327591091 : f32
    %129 = vector.broadcast %cst_30 : f32 to vector<8x256xf32>
    %130 = arith.mulf %129, %128 : vector<8x256xf32>
    %cst_31 = arith.constant 1.000000e+00 : f32
    %131 = vector.broadcast %cst_31 : f32 to vector<8x256xf32>
    %132 = arith.addf %131, %130 : vector<8x256xf32>
    %cst_32 = arith.constant 1.000000e+00 : f32
    %133 = vector.broadcast %cst_32 : f32 to vector<8x256xf32>
    %134 = arith.divf %133, %132 : vector<8x256xf32>
    %cst_33 = arith.constant 1.06140542 : f32
    %135 = vector.broadcast %cst_33 : f32 to vector<8x256xf32>
    %136 = arith.mulf %135, %134 : vector<8x256xf32>
    %cst_34 = arith.constant -1.45315206 : f32
    %137 = vector.broadcast %cst_34 : f32 to vector<8x256xf32>
    %138 = arith.addf %136, %137 : vector<8x256xf32>
    %139 = arith.mulf %138, %134 : vector<8x256xf32>
    %cst_35 = arith.constant 1.42141378 : f32
    %140 = vector.broadcast %cst_35 : f32 to vector<8x256xf32>
    %141 = arith.addf %139, %140 : vector<8x256xf32>
    %142 = arith.mulf %141, %134 : vector<8x256xf32>
    %cst_36 = arith.constant -0.284496725 : f32
    %143 = vector.broadcast %cst_36 : f32 to vector<8x256xf32>
    %144 = arith.addf %142, %143 : vector<8x256xf32>
    %145 = arith.mulf %144, %134 : vector<8x256xf32>
    %cst_37 = arith.constant 0.254829586 : f32
    %146 = vector.broadcast %cst_37 : f32 to vector<8x256xf32>
    %147 = arith.addf %145, %146 : vector<8x256xf32>
    %148 = arith.mulf %147, %134 : vector<8x256xf32>
    %cst_38 = arith.constant 0.000000e+00 : f32
    %149 = vector.broadcast %cst_38 : f32 to vector<8x256xf32>
    %150 = arith.subf %149, %128 : vector<8x256xf32>
    %151 = arith.mulf %150, %128 : vector<8x256xf32>
    %152 = math.exp %151 : vector<8x256xf32>
    %153 = arith.mulf %148, %152 : vector<8x256xf32>
    %cst_39 = arith.constant 1.000000e+00 : f32
    %154 = vector.broadcast %cst_39 : f32 to vector<8x256xf32>
    %155 = arith.subf %154, %153 : vector<8x256xf32>
    %cst_40 = arith.constant 0.000000e+00 : f32
    %156 = vector.broadcast %cst_40 : f32 to vector<8x256xf32>
    %157 = arith.cmpf oge, %127, %156 : vector<8x256xf32>
    %cst_41 = arith.constant 0.000000e+00 : f32
    %158 = vector.broadcast %cst_41 : f32 to vector<8x256xf32>
    %159 = arith.subf %158, %155 : vector<8x256xf32>
    %160 = arith.select %157, %155, %159 : vector<8x256xi1>, vector<8x256xf32>
    %cst_42 = arith.constant 1.000000e+00 : f32
    %161 = vector.broadcast %cst_42 : f32 to vector<8x256xf32>
    %162 = arith.addf %161, %160 : vector<8x256xf32>
    %163 = arith.mulf %125, %162 : vector<8x256xf32>
    %cst_43 = arith.constant dense<0.000000e+00> : vector<8xf32>
    %164 = vector.multi_reduction <add>, %163, %cst_43 [1] : vector<8x256xf32> to vector<8xf32>
    %165 = vector.shape_cast %164 : vector<8xf32> to vector<8x1xf32>
    %cst_44 = arith.constant 2.560000e+02 : f32
    %166 = vector.broadcast %cst_44 : f32 to vector<8x1xf32>
    %167 = arith.divf %165, %166 : vector<8x1xf32>
    %c0_45 = arith.constant 0 : index
    %c0_46 = arith.constant 0 : index
    %168 = vector.load %arg7[%c0_45, %c0_46] : memref<8x2xf32, #tpu.memory_space<vmem>>, vector<8x2xf32>
    %169 = vector.broadcast %167 : vector<8x1xf32> to vector<8x2xf32>
    %170 = arith.mulf %168, %169 : vector<8x2xf32>
    %cst_47 = arith.constant dense<0.000000e+00> : vector<2xf32>
    %171 = vector.multi_reduction <add>, %170, %cst_47 [0] : vector<8x2xf32> to vector<2xf32>
    %172 = vector.shape_cast %171 : vector<2xf32> to vector<1x2xf32>
    %c0_48 = arith.constant 0 : index
    %c0_49 = arith.constant 0 : index
    %173 = vector.load %arg8[%c0_48, %c0_49] : memref<1x2xf32, #tpu.memory_space<vmem>>, vector<1x2xf32>
    %174 = arith.addf %172, %173 : vector<1x2xf32>
    %cst_50 = arith.constant 5.000000e-01 : f32
    %175 = vector.broadcast %cst_50 : f32 to vector<1x2xf32>
    %176 = arith.mulf %175, %174 : vector<1x2xf32>
    %cst_51 = arith.constant 0.707106769 : f32
    %177 = vector.broadcast %cst_51 : f32 to vector<1x2xf32>
    %178 = arith.mulf %174, %177 : vector<1x2xf32>
    %179 = math.absf %178 : vector<1x2xf32>
    %cst_52 = arith.constant 0.327591091 : f32
    %180 = vector.broadcast %cst_52 : f32 to vector<1x2xf32>
    %181 = arith.mulf %180, %179 : vector<1x2xf32>
    %cst_53 = arith.constant 1.000000e+00 : f32
    %182 = vector.broadcast %cst_53 : f32 to vector<1x2xf32>
    %183 = arith.addf %182, %181 : vector<1x2xf32>
    %cst_54 = arith.constant 1.000000e+00 : f32
    %184 = vector.broadcast %cst_54 : f32 to vector<1x2xf32>
    %185 = arith.divf %184, %183 : vector<1x2xf32>
    %cst_55 = arith.constant 1.06140542 : f32
    %186 = vector.broadcast %cst_55 : f32 to vector<1x2xf32>
    %187 = arith.mulf %186, %185 : vector<1x2xf32>
    %cst_56 = arith.constant -1.45315206 : f32
    %188 = vector.broadcast %cst_56 : f32 to vector<1x2xf32>
    %189 = arith.addf %187, %188 : vector<1x2xf32>
    %190 = arith.mulf %189, %185 : vector<1x2xf32>
    %cst_57 = arith.constant 1.42141378 : f32
    %191 = vector.broadcast %cst_57 : f32 to vector<1x2xf32>
    %192 = arith.addf %190, %191 : vector<1x2xf32>
    %193 = arith.mulf %192, %185 : vector<1x2xf32>
    %cst_58 = arith.constant -0.284496725 : f32
    %194 = vector.broadcast %cst_58 : f32 to vector<1x2xf32>
    %195 = arith.addf %193, %194 : vector<1x2xf32>
    %196 = arith.mulf %195, %185 : vector<1x2xf32>
    %cst_59 = arith.constant 0.254829586 : f32
    %197 = vector.broadcast %cst_59 : f32 to vector<1x2xf32>
    %198 = arith.addf %196, %197 : vector<1x2xf32>
    %199 = arith.mulf %198, %185 : vector<1x2xf32>
    %cst_60 = arith.constant 0.000000e+00 : f32
    %200 = vector.broadcast %cst_60 : f32 to vector<1x2xf32>
    %201 = arith.subf %200, %179 : vector<1x2xf32>
    %202 = arith.mulf %201, %179 : vector<1x2xf32>
    %203 = math.exp %202 : vector<1x2xf32>
    %204 = arith.mulf %199, %203 : vector<1x2xf32>
    %cst_61 = arith.constant 1.000000e+00 : f32
    %205 = vector.broadcast %cst_61 : f32 to vector<1x2xf32>
    %206 = arith.subf %205, %204 : vector<1x2xf32>
    %cst_62 = arith.constant 0.000000e+00 : f32
    %207 = vector.broadcast %cst_62 : f32 to vector<1x2xf32>
    %208 = arith.cmpf oge, %178, %207 : vector<1x2xf32>
    %cst_63 = arith.constant 0.000000e+00 : f32
    %209 = vector.broadcast %cst_63 : f32 to vector<1x2xf32>
    %210 = arith.subf %209, %206 : vector<1x2xf32>
    %211 = arith.select %208, %206, %210 : vector<1x2xi1>, vector<1x2xf32>
    %cst_64 = arith.constant 1.000000e+00 : f32
    %212 = vector.broadcast %cst_64 : f32 to vector<1x2xf32>
    %213 = arith.addf %212, %211 : vector<1x2xf32>
    %214 = arith.mulf %176, %213 : vector<1x2xf32>
    %c0_65 = arith.constant 0 : index
    %c0_66 = arith.constant 0 : index
    %215 = vector.load %arg9[%c0_65, %c0_66] : memref<8x2xf32, #tpu.memory_space<vmem>>, vector<8x2xf32>
    %216 = vector.broadcast %214 : vector<1x2xf32> to vector<8x2xf32>
    %217 = arith.mulf %215, %216 : vector<8x2xf32>
    %cst_67 = arith.constant dense<0.000000e+00> : vector<8xf32>
    %218 = vector.multi_reduction <add>, %217, %cst_67 [1] : vector<8x2xf32> to vector<8xf32>
    %219 = vector.shape_cast %218 : vector<8xf32> to vector<8x1xf32>
    %c0_68 = arith.constant 0 : index
    %c0_69 = arith.constant 0 : index
    %220 = vector.load %arg10[%c0_68, %c0_69] : memref<8x1xf32, #tpu.memory_space<vmem>>, vector<8x1xf32>
    %221 = arith.addf %219, %220 : vector<8x1xf32>
    %222 = arith.negf %221 : vector<8x1xf32>
    %223 = math.exp %222 : vector<8x1xf32>
    %cst_70 = arith.constant 1.000000e+00 : f32
    %224 = vector.broadcast %cst_70 : f32 to vector<8x1xf32>
    %225 = arith.addf %224, %223 : vector<8x1xf32>
    %226 = arith.divf %224, %225 : vector<8x1xf32>
    %227 = vector.broadcast %226 : vector<8x1xf32> to vector<8x256xf32>
    %228 = arith.mulf %163, %227 : vector<8x256xf32>
    %c0_71 = arith.constant 0 : index
    %c0_72 = arith.constant 0 : index
    %229 = vector.load %arg11[%c0_71, %c0_72] : memref<4x8xf32, #tpu.memory_space<vmem>>, vector<4x8xf32>
    %cst_73 = arith.constant dense<0.000000e+00> : vector<4x256xf32>
    %230 = tpu.matmul %229, %228, %cst_73 {dimension_numbers = #tpu.dot_dimension_numbers<[1], [0], [0], [1], [0, 0, 1, 1], [], []>} : vector<4x8xf32>, vector<8x256xf32>, vector<4x256xf32> -> vector<4x256xf32>
    %c0_74 = arith.constant 0 : index
    %c0_75 = arith.constant 0 : index
    %231 = vector.load %arg12[%c0_74, %c0_75] : memref<4x1xf32, #tpu.memory_space<vmem>>, vector<4x1xf32>
    %232 = vector.broadcast %231 : vector<4x1xf32> to vector<4x256xf32>
    %233 = arith.addf %230, %232 : vector<4x256xf32>
    %c0_76 = arith.constant 0 : index
    %c0_77 = arith.constant 0 : index
    %c0_78 = arith.constant 0 : index
    %234 = vector.load %arg13[%c0_76, %c0_77, %c0_78] : memref<1x4x256xf32, #tpu.memory_space<vmem>>, vector<1x4x256xf32>
    %235 = vector.shape_cast %234 : vector<1x4x256xf32> to vector<4x256xf32>
    %236 = vector.shape_cast %233 : vector<4x256xf32> to vector<1x4x256xf32>
    tpu.vector_store %arg13[%c0_76, %c0_77, %c0_78], %236 {strides = array<i32>} : memref<1x4x256xf32, #tpu.memory_space<vmem>>, vector<1x4x256xf32>,
    return
  }
  func.func @transform_0(%arg0: i32) -> (i32, i32, i32) {
    %c0_i32 = arith.constant 0 : i32
    %c0_i32_0 = arith.constant 0 : i32
    %c0_i32_1 = arith.constant 0 : i32
    return %arg0, %c0_i32, %c0_i32_0 : i32, i32, i32
  }
  func.func @transform_1(%arg0: i32) -> (i32, i32) {
    %c0_i32 = arith.constant 0 : i32
    %c0_i32_0 = arith.constant 0 : i32
    %c0_i32_1 = arith.constant 0 : i32
    return %c0_i32, %c0_i32_0 : i32, i32
  }
  func.func @transform_2(%arg0: i32) -> (i32, i32) {
    %c0_i32 = arith.constant 0 : i32
    %c0_i32_0 = arith.constant 0 : i32
    %c0_i32_1 = arith.constant 0 : i32
    return %c0_i32, %c0_i32_0 : i32, i32
  }
  func.func @transform_3(%arg0: i32) -> (i32, i32) {
    %c0_i32 = arith.constant 0 : i32
    %c0_i32_0 = arith.constant 0 : i32
    %c0_i32_1 = arith.constant 0 : i32
    return %c0_i32, %c0_i32_0 : i32, i32
  }
  func.func @transform_4(%arg0: i32) -> (i32, i32) {
    %c0_i32 = arith.constant 0 : i32
    %c0_i32_0 = arith.constant 0 : i32
    %c0_i32_1 = arith.constant 0 : i32
    return %c0_i32, %c0_i32_0 : i32, i32
  }
  func.func @transform_5(%arg0: i32) -> (i32, i32) {
    %c0_i32 = arith.constant 0 : i32
    %c0_i32_0 = arith.constant 0 : i32
    %c0_i32_1 = arith.constant 0 : i32
    return %c0_i32, %c0_i32_0 : i32, i32
  }
  func.func @transform_6(%arg0: i32) -> (i32, i32) {
    %c0_i32 = arith.constant 0 : i32
    %c0_i32_0 = arith.constant 0 : i32
    %c0_i32_1 = arith.constant 0 : i32
    return %c0_i32, %c0_i32_0 : i32, i32
  }
  func.func @transform_7(%arg0: i32) -> (i32, i32) {
    %c0_i32 = arith.constant 0 : i32
    %c0_i32_0 = arith.constant 0 : i32
    %c0_i32_1 = arith.constant 0 : i32
    return %c0_i32, %c0_i32_0 : i32, i32
  }
  func.func @transform_8(%arg0: i32) -> (i32, i32) {
    %c0_i32 = arith.constant 0 : i32
    %c0_i32_0 = arith.constant 0 : i32
    %c0_i32_1 = arith.constant 0 : i32
    return %c0_i32, %c0_i32_0 : i32, i32
  }
  func.func @transform_9(%arg0: i32) -> (i32, i32) {
    %c0_i32 = arith.constant 0 : i32
    %c0_i32_0 = arith.constant 0 : i32
    %c0_i32_1 = arith.constant 0 : i32
    return %c0_i32, %c0_i32_0 : i32, i32
  }
  func.func @transform_10(%arg0: i32) -> (i32, i32) {
    %c0_i32 = arith.constant 0 : i32
    %c0_i32_0 = arith.constant 0 : i32
    %c0_i32_1 = arith.constant 0 : i32
    return %c0_i32, %c0_i32_0 : i32, i32
  }
  func.func @transform_11(%arg0: i32) -> (i32, i32) {
    %c0_i32 = arith.constant 0 : i32
    %c0_i32_0 = arith.constant 0 : i32
    %c0_i32_1 = arith.constant 0 : i32
    return %c0_i32, %c0_i32_0 : i32, i32
  }
  func.func @transform_12(%arg0: i32) -> (i32, i32, i32) {
    %c0_i32 = arith.constant 0 : i32
    %c0_i32_0 = arith.constant 0 : i32
    %c0_i32_1 = arith.constant 0 : i32
    return %arg0, %c0_i32, %c0_i32_0 : i32, i32, i32
  }
}

</mosaic_0001>

<bundles_post_ra>
// kernel: tpu_custom_call.1
= control target key start
LH: loop header
LB: loop body
LE: loop exit
PB: predicated region body
PF: predicated region fallthrough
CT: control target
= control target key end

     0   :  { %s1634_s0 = inlined_call_operand.vmem [shape: f32[2,4,256], index: 0, kind: input, shape index: {}]   ;;  %s1635_s1 = inlined_call_operand.vmem [shape: f32[9,256], index: 1, kind: input, shape index: {}]   ;;  %s1636_s2 = inlined_call_operand.vmem [shape: f32[8,4], index: 2, kind: input, shape index: {}]   ;;  %s1637_s3 = inlined_call_operand.vmem [shape: f32[8,1], index: 3, kind: input, shape index: {}]   ;;  %s1638_s4 = inlined_call_operand.vmem [shape: f32[8,9], index: 4, kind: input, shape index: {}]   ;;  %s1639_s5 = inlined_call_operand.vmem [shape: f32[8,1], index: 5, kind: input, shape index: {}]   ;;  %s1640_s6 = inlined_call_operand.vmem [shape: f32[8,2], index: 6, kind: input, shape index: {}]   ;;  %s1641_s7 = inlined_call_operand.vmem [shape: f32[1,2], index: 7, kind: input, shape index: {}]   ;;  %s1642_s8 = inlined_call_operand.vmem [shape: f32[8,2], index: 8, kind: input, shape index: {}]   ;;  %s1643_s9 = inlined_call_operand.vmem [shape: f32[8,1], index: 9, kind: input, shape index: {}]   ;;  %s1644_s10 = inlined_call_operand.vmem [shape: f32[4,8], index: 10, kind: input, shape index: {}]   ;;  %s1645_s11 = inlined_call_operand.vmem [shape: f32[4,1], index: 11, kind: input, shape index: {}]   ;;  %s1646_s12 = inlined_call_operand.hbm [shape: f32[2,4,256], index: 12, kind: output, shape index: {}]  }
   0x1   :  { %1647 = sst [smem:[#allocation5_spill]] %s1634_s0 }
   0x2   :  { %1648 = sst [smem:[#allocation6_spill]] %s1635_s1 }
   0x3   :  { %17 = vsyncpa [#allocation3], 0 }
   0x4   :  { %19 = vsyncpa [#allocation3 + $0x1], 0  ;;  %s1335_s21 = smov 0   ;;  %s1337_s22 = smov 0  }
   0x5   :  { %s1339_s23 = smov 0   ;;  %s1341_s24 = smov 0  }
   0x6 LB: > { %s1356_s25 = sadd.s32 4294967295, %s1249_s24   ;;  %s1073_s26 = sadd.s32 4294967294, %s1249_s24   ;;  %s1249_s24 = sphi %s1341_s24, %s1656_s24   ;;  %s1245_s23 = sphi %s1339_s23, %s1655_s23   ;;  %s1241_s22 = sphi %s1337_s22, %s1654_s22   ;;  %s1237_s21 = sphi %s1335_s21, %s1653_s21  }
   0x7   : > { %s1360_s27 = sadd.s32 1, %s1249_s24   ;;  %s289_s28 = sadd.s32 1, %s1245_s23 }
   0x8   : > { %s286_s29 = ssub.s32 %s1249_s24, %s1360_s27  ;;  %p299_p0 = scmp.ne.s32.totalorder %s1245_s23, %s1241_s22 }
   0x9   : > { %p287_p1 = scmp.eq.s32.totalorder %s286_s29, 0  ;;  %p300_p2 = scmp.eq.s32.totalorder %s1356_s25, 1 }
   0xa   : > { %p305_p3 = scmp.ne.s32.totalorder %s1241_s22, %s1237_s21  ;;  %p306_p4 = scmp.eq.s32.totalorder %s1073_s26, 1 }
   0xb   : > { %s1371_s30 = scalar_select %p287_p1, %s1245_s23, %s289_s28  }
   0xc   : > { %p1373_p5 = por %p300_p2, %p299_p0  ;;  %p1377_p6 = por %p306_p4, %p305_p3 }
   0xd   : > { %p1076_p7 = scmp.ge.s32.totalorder %s1249_s24, 1  ;;  %p365_p8 = scmp.lt.s32.totalorder %s1249_s24, 3 }
   0xf   : > { %p366_p9 = pnand %p1076_p7, %p365_p8 }
  0x10   : > { %p407_p10 = scmp.lt.s32.totalorder (!%p366_p9), %s1356_s25, 1  ;;  %v1251_v0 = vmov (!%p366_p9), 0.0   ;;  %v1252_v1 = vmov (!%p366_p9), 0   ;;  %v414_v2 = vld [vmem:[%s1637_s3] sm:$0xff] (!%p366_p9)  ;;  %s1651_s0 = sld [smem:[#allocation5_spill]] (!%p366_p9)  ;;  %vm426_vm0 = vcmask (!%p366_p9), 1043456  }
  0x11   : > { %369 = sbr.rel (%p366_p9) target bundleno = 1257 (0x4e9), region = 68  ;;  %495 = vmatprep.mubr.f32.mxu0 (!%p366_p9), %v1251_v0  ;;  %1151 = vset.pattern.permute.xlu0 (!%p366_p9), %v1252_v1  ;;  %v556_v3 = vld [vmem:[%s1638_s4] sm:$0xff] (!%p366_p9)  ;;  %v1253_v5 = vmov (!%p366_p9), 3   ;;  %vm422_vm1 = vcmask (!%p366_p9), 31744   ;;  %v1254_v8 = vmov (!%p366_p9), 4   ;;  %v1255_v9 = vmov (!%p366_p9), 1  }
  0x12   : > { %417 = vperm.xlu0 (!%p366_p9), %1151, %v414_v2   ;;  %987 = vmatprep.mubr.f32.mxu1 (!%p366_p9), %v1251_v0  ;;  %v413_v7 = vld [vmem:[%s1636_s2] sm:$0xff] (!%p366_p9)  ;;  %v1256_v10 = vmov (!%p366_p9), 2   ;;  %v1257_v11 = vmov (!%p366_p9), 5   ;;  %v1258_v12 = vmov (!%p366_p9), 6   ;;  %v1259_v13 = vmov (!%p366_p9), 8   ;;  %s1263_s19 = smov (!%p366_p9), 1  }
  0x13   : > { %1152 = vset.pattern.permute.xlu1 (!%p366_p9), %v1255_v9  ;;  %v1260_v14 = vmov (!%p366_p9), 7   ;;  %s1264_s20 = smov (!%p366_p9), 16   ;;  %s1265_s26 = smov (!%p366_p9), 127   ;;  %vm851_vm14 = vcmask (!%p366_p9), 15360  }
  0x14   : > { %607 = vperm.xlu1 (!%p366_p9), %1152, %v556_v3   ;;  %s1266_s28 = smov (!%p366_p9), 113   ;;  %s1268_s15 = smov (!%p366_p9), 111  }
  0x15   : > { %s1652_s1 = sld [smem:[#allocation6_spill]] (!%p366_p9) }
  0x16   : > { %1154 = vset.pattern.permute.xlu0 (!%p366_p9), %v1253_v5 }
  0x17   : > { %657 = vperm.xlu0 (!%p366_p9), %1154, %v556_v3  }
  0x18   : > { %s408_s17 = scalar_select %p407_p10, %s1356_s25, 1  ;;  %1153 = vset.pattern.permute.xlu1 %v1256_v10 }
  0x19   : > { %632 = vperm.xlu1 %1153, %v556_v3  }
  0x1a   : > { %s1092_s18 = sshll.u32 %s408_s17, 3  ;;  %s1261_s17 = smov 15  }
  0x1b   : > { %s411_s29 = scalar_lea.vmem %s1651_s0, %s1092_s18  ;;  %1155 = vset.pattern.permute.xlu0 %v1254_v8  ;;  %s1262_s18 = smov 17  }
  0x1c   : > { %v412_v4 = vld [vmem:[%s411_s29] sm:$0xff]  ;;  %675 = vperm.xlu0 %1155, %v556_v3   ;;  %s1267_s29 = smov 112   ;;  %s404_s0 = sand.u32 1, %s1241_s22  }
  0x1d   : > { %v421_v6 = vcombine.high %v412_v4, %v412_v4  ;;  %1157 = vset.pattern.permute.xlu1 %v1258_v12 }
  0x1e   : > { %725 = vperm.xlu1 %1157, %v556_v3  }
  0x1f   : > { %1080 = vmatprep.subr.msk.mxu0 %vm426_vm0, %v421_v6  ;;  %v782_v6 = vld [vmem:[%s1639_s5] sm:$0xff] }
  0x20   : > { %1081 = vmatpush1.msk.msra.mxu0 %vm426_vm0, %v412_v4  ;;  %1156 = vset.pattern.permute.xlu0 %v1257_v11  ;;  %vm919_vm0 = vcmask 64512  }
  0x21   : > { %1082 = vmatmul.mubr.msk.f32.vlgmr.msra.gmra.mrb[0].mxu0 %vm422_vm1, %v413_v7  ;;  %700 = vperm.xlu0 %1156, %v556_v3  }
  0x22   : > { %1158 = vset.pattern.permute.xlu1 %v1260_v14 }
  0x23   : > { %750 = vperm.xlu1 %1158, %v556_v3  }
  0x25   : > { %1159 = vset.pattern.permute.xlu0 %v1259_v13 }
  0x26   : > { %775 = vperm.xlu0 %1159, %v556_v3  }
  0x27   : > { %1161 = vset.pattern.permute.xlu1 %v1252_v1 }
  0x2a   : > { %1160 = vset.pattern.permute.xlu0 %v1252_v1 }
  0x2b   : > { %582 = vperm.xlu0 %1160, %v556_v3  }
  0x91   : > { %v418_v15 = vpop.permute.xlu0 %417 }
  0x93   : > { %v1420_v7 = vpop.permute.xlu1 %607 }
  0x96   : > { %v1422_v8 = vpop.permute.xlu0 %657 }
  0x98   : > { %v1424_v9 = vpop.permute.xlu1 %632 }
  0x9b   : > { %v1426_v10 = vpop.permute.xlu0 %675 }
  0x9d   : > { %v1430_v12 = vpop.permute.xlu1 %725 }
  0xa0   : > { %v1428_v11 = vpop.permute.xlu0 %700 }
  0xa2   : > { %v1434_v14 = vpop.permute.xlu1 %750 }
  0xa5   : > { %v1432_v13 = vpop.permute.xlu0 %775 }
  0xf4   : > { %v497_v16 = vpop.f32.mrb[0].mxu0 }
  0xf5   : > { %v498_v17 = vadd.f32 %v497_v16, %v418_v15  ;;  %v499_v18 = vpop.f32.mrb[1].mxu0 }
  0xf6   : > { %v500_v19 = vadd.f32 %v499_v18, %v418_v15  ;;  %v1436_v15 = vpop.permute.xlu0 %582 }
  0xf7   : > { %v504_v20 = vmul.f32 0.70710677, %v498_v17  ;;  %v502_v62 = vmul.f32 0.5, %v498_v17  ;;  %v565_v17 = vlaneseq }
  0xf8   : > { %v505_v21 = vmul.f32 0.70710677, %v500_v19  ;;  %v503_v4 = vmul.f32 0.5, %v500_v19 }
  0xf9   : > { %v506_v22 = vand.u32 2147483647, %v504_v20  ;;  %vm546_vm2 = vcmp.ge.f32.partialorder %v504_v20, 0.0  ;;  %v1440_v20 = vshrl.u32 %v565_v17, 7 }
  0xfa   : > { %v507_v23 = vand.u32 2147483647, %v505_v21  ;;  %vm547_vm3 = vcmp.ge.f32.partialorder %v505_v21, 0.0 }
  0xfb   : > { %v508_v24 = vmul.f32 0.3275911, %v506_v22  ;;  %v534_v28 = vsub.f32 0.0, %v506_v22 }
  0xfc   : > { %v509_v25 = vmul.f32 0.3275911, %v507_v23  ;;  %v535_v29 = vsub.f32 0.0, %v507_v23 }
  0xfd   : > { %v510_v26 = vadd.f32 1.0, %v508_v24  ;;  %v536_v31 = vmul.f32 %v534_v28, %v506_v22  ;;  %v666_v22 = vsub.s32 4, %v1440_v20  ;;  %v1452_v28 = vand.u32 127, %v565_v17 }
  0xfe   : > { %v511_v27 = vadd.f32 1.0, %v509_v25  ;;  %v537_v35 = vmul.f32 %v535_v29, %v507_v23  ;;  %v1446_v23 = vld [vmem:[%s1652_s1] sm:$0xff]  ;;  %v1457_v29 = vld [vmem:[%s1652_s1 + $0x8] sm:$0xff] }
  0xff   : > { %1163 = vrcp.f32 %v510_v26  ;;  %v538_v37 = vmul.f32 1.442695, %v536_v31  ;;  %v598_v26 = vsub.s32 1, %v1440_v20  ;;  %vm567_vm4 = vcmp.lt.s32.totalorder %v1452_v28, 17 }
 0x100   : > { %1165 = vrcp.f32 %v511_v27  ;;  %v540_v41 = vmul.f32 1.442695, %v537_v35  ;;  %v667_v27 = vrot.slane %v1446_v23, %v666_v22  ;;  %vm593_vm5 = vcmp.lt.s32.totalorder %v1452_v28, 16 }
 0x101   : > { %1167 = vpow2.f32 %v538_v37  ;;  %v623_v35 = vsub.s32 2, %v1440_v20  ;;  %vm686_vm6 = vcmp.lt.s32.totalorder %v1452_v28, 127  ;;  %vm618_vm7 = vcmp.lt.s32.totalorder %v1452_v28, 15 }
 0x102   : > { %1169 = vpow2.f32 %v540_v41  ;;  %vm643_vm8 = vcmp.lt.s32.totalorder %v1452_v28, 1  ;;  %vm711_vm9 = vcmp.lt.s32.totalorder %v1452_v28, 113  ;;  %vm736_vm10 = vcmp.lt.s32.totalorder %v1452_v28, 112 }
 0x103   : > { %vm761_vm11 = vcmp.lt.s32.totalorder %v1452_v28, 111 }
 0x109   : > { %v1164_v30 = vpop.eup %1163 }
 0x10a   : > { %v1166_v32 = vpop.eup %1165  ;;  %v516_v33 = vmul.f32 1.0614054, %v1164_v30 }
 0x10b   : > { %v517_v34 = vmul.f32 1.0614054, %v1166_v32  ;;  %v1168_v53 = vpop.eup %1167 }
 0x10c   : > { %v518_v36 = vadd.f32 -1.4531521, %v516_v33  ;;  %v1170_v56 = vpop.eup %1169  ;;  %v599_v33 = vrot.slane %v1446_v23, %v598_v26 }
 0x10d   : > { %v519_v38 = vadd.f32 -1.4531521, %v517_v34  ;;  %v603_v34 = vrot.slane %v1457_v29, %v598_v26 }
 0x10e   : > { %v520_v39 = vmul.f32 %v1164_v30, %v518_v36  ;;  %v671_v36 = vrot.slane %v1457_v29, %v666_v22 }
 0x10f   : > { %v521_v40 = vmul.f32 %v1166_v32, %v519_v38  ;;  %v691_v38 = vsub.s32 5, %v1440_v20 }
 0x110   : > { %v522_v42 = vadd.f32 1.4214138, %v520_v39 }
 0x111   : > { %v523_v43 = vadd.f32 1.4214138, %v521_v40 }
 0x112   : > { %v524_v44 = vmul.f32 %v1164_v30, %v522_v42  ;;  %v648_v42 = vsub.s32 3, %v1440_v20 }
 0x113   : > { %v525_v45 = vmul.f32 %v1166_v32, %v523_v43 }
 0x114   : > { %v526_v46 = vadd.f32 -0.28449672, %v524_v44 }
 0x115   : > { %v527_v47 = vadd.f32 -0.28449672, %v525_v45 }
 0x116   : > { %v528_v48 = vmul.f32 %v1164_v30, %v526_v46 }
 0x117   : > { %v529_v49 = vmul.f32 %v1166_v32, %v527_v47 }
 0x118   : > { %v530_v50 = vadd.f32 0.2548296, %v528_v48 }
 0x119   : > { %v531_v51 = vadd.f32 0.2548296, %v529_v49  ;;  %v624_v49 = vrot.slane %v1446_v23, %v623_v35 }
 0x11a   : > { %v532_v52 = vmul.f32 %v1164_v30, %v530_v50  ;;  %v1460_v30 = vsub.s32 0, %v1440_v20  ;;  %v628_v50 = vrot.slane %v1457_v29, %v623_v35 }
 0x11b   : > { %v533_v54 = vmul.f32 %v1166_v32, %v531_v51 }
 0x11c   : > { %v542_v55 = vmul.f32 %v1168_v53, %v532_v52  ;;  %v573_v39 = vrot.slane %v1446_v23, %v1460_v30  ;;  %v577_v40 = vrot.slane %v1457_v29, %v1460_v30  ;;  %v692_v52 = vrot.slane %v1446_v23, %v691_v38 }
 0x11d   : > { %v543_v58 = vmul.f32 %v1170_v56, %v533_v54  ;;  %v696_v53 = vrot.slane %v1457_v29, %v691_v38  ;;  %v716_v54 = vsub.s32 6, %v1440_v20 }
 0x11e   : > { %v544_v57 = vsub.f32 1.0, %v542_v55 }
 0x11f   : > { %v545_v61 = vsub.f32 1.0, %v543_v58  ;;  %v721_v26 = vrot.slane %v1457_v29, %v716_v54 }
 0x120   : > { %v548_v59 = vsub.f32 0.0, %v544_v57 }
 0x121   : > { %v549_v1 = vsub.f32 0.0, %v545_v61 }
 0x122   : > { %v550_v60 = vsel %vm546_vm2, %v544_v57, %v548_v59 }
 0x123   : > { %v552_v63 = vadd.f32 1.0, %v550_v60  ;;  %v551_v2 = vsel %vm547_vm3, %v545_v61, %v549_v1 }
 0x124   : > { %v553_v3 = vadd.f32 1.0, %v551_v2 }
 0x125   : > { %v1397_v0 = vmul.f32 %v552_v63, %v502_v62  ;;  %v649_v62 = vrot.slane %v1446_v23, %v648_v42  ;;  %v653_v63 = vrot.slane %v1457_v29, %v648_v42 }
 0x126   : > { %v1405_v5 = vmul.f32 %v553_v3, %v503_v4 }
 0x127   : > { %614 = vrot.lane.b32.xlu1 %v1397_v0, %s1261_s17  ;;  %561 = vrot.lane.b32.xlu0 %v1397_v0, %s1262_s18  ;;  %v672_v37 = vmul.f32 %v667_v27, %v1397_v0  ;;  %v741_v27 = vsub.s32 7, %v1440_v20 }
 0x128   : > { %v673_v51 = vmul.f32 %v671_v36, %v1405_v5 }
 0x129   : > { %v678_v55 = vmul.f32 %v1426_v10, %v672_v37  ;;  %v746_v42 = vrot.slane %v1457_v29, %v741_v27 }
 0x12a   : > { %v679_v35 = vmul.f32 %v1426_v10, %v673_v51  ;;  %v742_v10 = vrot.slane %v1446_v23, %v741_v27 }
 0x12b   : > { %639 = vrot.lane.b32.xlu1 %v1397_v0, %s1263_s19  ;;  %589 = vrot.lane.b32.xlu0 %v1397_v0, %s1264_s20 }
 0x12f   : > { %682 = vrot.lane.b32.xlu1 %v1397_v0, %s1265_s26  ;;  %707 = vrot.lane.b32.xlu0 %v1397_v0, %s1266_s28 }
 0x133   : > { %732 = vrot.lane.b32.xlu1 %v1397_v0, %s1267_s29  ;;  %684 = vrot.lane.b32.xlu0 %v1405_v5, %s1265_s26 }
 0x137   : > { %563 = vrot.lane.b32.xlu1 %v1405_v5, %s1262_s18  ;;  %757 = vrot.lane.b32.xlu0 %v1397_v0, %s1268_s15  ;;  %s1093_s18 = sshll.u32 %s1356_s25, 7  ;;  %s1269_s25 = smov [#allocation2]  }
 0x13b   : > { %591 = vrot.lane.b32.xlu1 %v1405_v5, %s1264_s20  ;;  %785 = vperm.xlu0 %1160, %v782_v6   ;;  %v717_v6 = vrot.slane %v1446_v23, %v716_v54 }
 0x13f   : > { %616 = vrot.lane.b32.xlu1 %v1405_v5, %s1261_s17  ;;  %s1077_s17 = sshll.u32 %s404_s0, 3 }
 0x143   : > { %641 = vrot.lane.b32.xlu1 %v1405_v5, %s1263_s19  ;;  %s406_s19 = scalar_lea.vmem [#allocation2], %s1077_s17  ;;  %s1191_s17 = sshll.u32 %s1269_s25, 4  ;;  %s1192_s17 = int_to_ptr.vmem [resolvable:$false] %s1191_s17 }
 0x144   : > { %s1014_s20 = sshll.u32 %s406_s19, 4  ;;  %s1594_s20 = int_to_ptr.vmem [resolvable:$true] %s1014_s20 }
 0x145   : > { %s1187_s16 = scalar_lea.vmem %s1594_s20, 128  ;;  %p1194_p0 = scmp.lt.s32.totalorder %s1594_s20, %s1192_s17 }
 0x146   : > { %p1188_p11 = scmp.ne.s32.totalorder %s1594_s20, %s1187_s16 }
 0x147   : > { %709 = vrot.lane.b32.xlu1 %v1405_v5, %s1266_s28 }
 0x148   : > { %p1189_p12 = pnand %p1188_p11, %p1373_p5 }
 0x14a   : > { %p1190_p13 = pneg %p1189_p12 }
 0x14b   : > { %734 = vrot.lane.b32.xlu1 %v1405_v5, %s1267_s29  ;;  %s1592_s29 = scalar_lea.hbm %s1646_s12, %s1093_s18 }
 0x14f   : > { %759 = vrot.lane.b32.xlu1 %v1405_v5, %s1268_s15  ;;  %s1000_s15 = scalar_lea.sflag [#allocation3], %s404_s0 }
 0x199   : > { %v615_v16 = vpop.permute.xlu1 %614  ;;  %v562_v19 = vpop.permute.xlu0 %561 }
 0x19d   : > { %v1438_v18 = vpop.permute.xlu1 %639  ;;  %v590_v24 = vpop.permute.xlu0 %589 }
 0x1a1   : > { %v683_v21 = vpop.permute.xlu1 %682  ;;  %v1463_v32 = vpop.permute.xlu0 %707 }
 0x1a5   : > { %v1448_v25 = vpop.permute.xlu1 %732  ;;  %v685_v56 = vpop.permute.xlu0 %684 }
 0x1a6   : > { %v687_v4 = vsel %vm686_vm6, %v683_v21, %v685_v56  ;;  %v688_v5 = vsel %vm686_vm6, %v685_v56, %v683_v21 }
 0x1a7   : > { %v698_v36 = vmul.f32 %v696_v53, %v688_v5 }
 0x1a9   : > { %v564_v31 = vpop.permute.xlu1 %563 }
 0x1aa   : > { %v568_v43 = vsel %vm567_vm4, %v562_v19, %v564_v31  ;;  %v569_v44 = vsel %vm567_vm4, %v564_v31, %v562_v19 }
 0x1ab   : > { %v578_v57 = vmul.f32 %v573_v39, %v569_v44  ;;  %v579_v58 = vmul.f32 %v577_v40, %v568_v43 }
 0x1ad   : > { %v592_v41 = vpop.permute.xlu1 %591  ;;  %v586_v17 = vmul.f32 %v1436_v15, %v579_v58 }
 0x1ae   : > { %v594_v45 = vsel %vm593_vm5, %v590_v24, %v592_v41  ;;  %v595_v46 = vsel %vm593_vm5, %v592_v41, %v590_v24 }
 0x1af   : > { %v604_v47 = vmul.f32 %v599_v33, %v595_v46  ;;  %v605_v48 = vmul.f32 %v603_v34, %v594_v45 }
 0x1b1   : > { %v617_v59 = vpop.permute.xlu1 %616  ;;  %v610_v0 = vmul.f32 %v1420_v7, %v604_v47  ;;  %v611_v1 = vmul.f32 %v1420_v7, %v605_v48  ;;  %v704_v47 = vmul.f32 %v1428_v11, %v698_v36 }
 0x1b2   : > { %v619_v60 = vsel %vm618_vm7, %v615_v16, %v617_v59  ;;  %v620_v61 = vsel %vm618_vm7, %v617_v59, %v615_v16  ;;  %v585_v16 = vmul.f32 %v1436_v15, %v578_v57 }
 0x1b3   : > { %v629_v2 = vmul.f32 %v624_v49, %v620_v61  ;;  %v630_v3 = vmul.f32 %v628_v50, %v619_v60  ;;  %v613_v33 = vadd.f32 %v611_v1, %v586_v17 }
 0x1b4   : > { %v612_v31 = vadd.f32 %v610_v0, %v585_v16 }
 0x1b5   : > { %v635_v19 = vmul.f32 %v1424_v9, %v629_v2  ;;  %v636_v7 = vmul.f32 %v1424_v9, %v630_v3  ;;  %v642_v22 = vpop.permute.xlu1 %641  ;;  %v697_v9 = vmul.f32 %v692_v52, %v687_v4 }
 0x1b6   : > { %v644_v24 = vsel %vm643_vm8, %v1438_v18, %v642_v22  ;;  %v645_v21 = vsel %vm643_vm8, %v642_v22, %v1438_v18 }
 0x1b7   : > { %v654_v15 = vmul.f32 %v649_v62, %v645_v21  ;;  %v655_v34 = vmul.f32 %v653_v63, %v644_v24  ;;  %v637_v37 = vadd.f32 %v635_v19, %v612_v31  ;;  %v638_v38 = vadd.f32 %v636_v7, %v613_v33 }
 0x1b9   : > { %v660_v39 = vmul.f32 %v1422_v8, %v654_v15  ;;  %v661_v18 = vmul.f32 %v1422_v8, %v655_v34  ;;  %v710_v40 = vpop.permute.xlu1 %709  ;;  %v703_v8 = vmul.f32 %v1428_v11, %v697_v9  ;;  %v1083_v11 = vld [vmem:[%s1652_s1 + $0x10] ss:$0 sm:$0xff] }
 0x1ba   : > { %v712_v20 = vsel %vm711_vm9, %v1463_v32, %v710_v40  ;;  %v713_v41 = vsel %vm711_vm9, %v710_v40, %v1463_v32 }
 0x1bb   : > { %v662_v43 = vadd.f32 %v660_v39, %v637_v37  ;;  %v663_v44 = vadd.f32 %v661_v18, %v638_v38  ;;  %v722_v45 = vmul.f32 %v717_v6, %v712_v20  ;;  %v723_v46 = vmul.f32 %v721_v26, %v713_v41 }
 0x1bd   : > { %v680_v48 = vadd.f32 %v678_v55, %v662_v43  ;;  %v681_v49 = vadd.f32 %v679_v35, %v663_v44  ;;  %v735_v50 = vpop.permute.xlu1 %734  ;;  %v728_v51 = vmul.f32 %v1430_v12, %v722_v45  ;;  %v729_v32 = vmul.f32 %v1430_v12, %v723_v46  ;;  %v1084_v12 = vld [vmem:[%s1652_s1 + $0x18] ss:$0 sm:$0xff]  ;;  %v758_v55 = vpop.permute.xlu0 %757  ;;  %s1193_s1 = scalar_lea.vmem %s1192_s17, 256 }
 0x1be   : > { %v737_v23 = vsel %vm736_vm10, %v1448_v25, %v735_v50  ;;  %v738_v29 = vsel %vm736_vm10, %v735_v50, %v1448_v25  ;;  %p1195_p1 = scmp.lt.s32.totalorder %s1193_s1, %s1187_s16 }
 0x1bf   : > { %v705_v52 = vadd.f32 %v703_v8, %v680_v48  ;;  %v706_v53 = vadd.f32 %v704_v47, %v681_v49  ;;  %v747_v54 = vmul.f32 %v742_v10, %v737_v23  ;;  %v748_v56 = vmul.f32 %v746_v42, %v738_v29 }
 0x1c0   : > { %p1196_p2 = por %p1195_p1, %p1194_p0 }
 0x1c1   : > { %v730_v57 = vadd.f32 %v728_v51, %v705_v52  ;;  %v731_v58 = vadd.f32 %v729_v32, %v706_v53  ;;  %v753_v59 = vmul.f32 %v1434_v14, %v747_v54  ;;  %v754_v60 = vmul.f32 %v1434_v14, %v748_v56  ;;  %v760_v25 = vpop.permute.xlu1 %759  ;;  %v786_v16 = vpop.permute.xlu0 %785 }
 0x1c2   : > { %v762_v61 = vsel %vm761_vm11, %v758_v55, %v760_v25  ;;  %v763_v62 = vsel %vm761_vm11, %v760_v25, %v758_v55  ;;  %p1197_p3 = pnand %p1196_p2, %p1190_p13 }
 0x1c3   : > { %v772_v63 = vmul.f32 %v1083_v11, %v762_v61  ;;  %v773_v0 = vmul.f32 %v1084_v12, %v763_v62  ;;  %v755_v1 = vadd.f32 %v753_v59, %v730_v57  ;;  %v756_v2 = vadd.f32 %v754_v60, %v731_v58  ;;  %v849_v62 = vld [vmem:[%s1640_s6] sm:$0xff] }
 0x1c5   : > { %v778_v3 = vmul.f32 %v1432_v13, %v772_v63  ;;  %v779_v4 = vmul.f32 %v1432_v13, %v773_v0 }
 0x1c7   : > { %v780_v5 = vadd.f32 %v778_v3, %v755_v1  ;;  %v781_v6 = vadd.f32 %v779_v4, %v756_v2 }
 0x1c9   : > { %v788_v17 = vadd.f32 %v786_v16, %v780_v5  ;;  %v789_v14 = vadd.f32 %v786_v16, %v781_v6 }
 0x1cb   : > { %v792_v19 = vmul.f32 0.70710677, %v788_v17  ;;  %v793_v7 = vmul.f32 0.70710677, %v789_v14  ;;  %v790_v12 = vmul.f32 0.5, %v788_v17  ;;  %v791_v58 = vmul.f32 0.5, %v789_v14 }
 0x1cc   : > { %v859_v17 = vld [vmem:[%s1641_s7] sm:$0x1] }
 0x1cd   : > { %v794_v22 = vand.u32 2147483647, %v792_v19  ;;  %v795_v24 = vand.u32 2147483647, %v793_v7  ;;  %vm834_vm12 = vcmp.ge.f32.partialorder %v792_v19, 0.0  ;;  %vm835_vm13 = vcmp.ge.f32.partialorder %v793_v7, 0.0 }
 0x1cf   : > { %v796_v21 = vmul.f32 0.3275911, %v794_v22  ;;  %v797_v28 = vmul.f32 0.3275911, %v795_v24  ;;  %v822_v31 = vsub.f32 0.0, %v794_v22  ;;  %v823_v33 = vsub.f32 0.0, %v795_v24 }
 0x1d1   : > { %v798_v26 = vadd.f32 1.0, %v796_v21  ;;  %v799_v27 = vadd.f32 1.0, %v797_v28  ;;  %v824_v34 = vmul.f32 %v822_v31, %v794_v22  ;;  %v825_v9 = vmul.f32 %v823_v33, %v795_v24 }
 0x1d3   : > { %1171 = vrcp.f32 %v798_v26  ;;  %v826_v39 = vmul.f32 1.442695, %v824_v34  ;;  %v828_v40 = vmul.f32 1.442695, %v825_v9 }
 0x1d4   : > { %1173 = vrcp.f32 %v799_v27 }
 0x1d5   : > { %1175 = vpow2.f32 %v826_v39 }
 0x1d6   : > { %1177 = vpow2.f32 %v828_v40 }
 0x1dd   : > { %v1172_v15 = vpop.eup %1171 }
 0x1de   : > { %v1174_v13 = vpop.eup %1173  ;;  %v804_v35 = vmul.f32 1.0614054, %v1172_v15 }
 0x1df   : > { %v805_v36 = vmul.f32 1.0614054, %v1174_v13  ;;  %v1176_v50 = vpop.eup %1175 }
 0x1e0   : > { %v806_v37 = vadd.f32 -1.4531521, %v804_v35  ;;  %v1178_v32 = vpop.eup %1177 }
 0x1e1   : > { %v807_v38 = vadd.f32 -1.4531521, %v805_v36 }
 0x1e2   : > { %v808_v18 = vmul.f32 %v1172_v15, %v806_v37 }
 0x1e3   : > { %v809_v20 = vmul.f32 %v1174_v13, %v807_v38 }
 0x1e4   : > { %v810_v41 = vadd.f32 1.4214138, %v808_v18 }
 0x1e5   : > { %v811_v10 = vadd.f32 1.4214138, %v809_v20 }
 0x1e6   : > { %v812_v42 = vmul.f32 %v1172_v15, %v810_v41 }
 0x1e7   : > { %v813_v43 = vmul.f32 %v1174_v13, %v811_v10 }
 0x1e8   : > { %v814_v44 = vadd.f32 -0.28449672, %v812_v42 }
 0x1e9   : > { %v815_v45 = vadd.f32 -0.28449672, %v813_v43 }
 0x1ea   : > { %v816_v46 = vmul.f32 %v1172_v15, %v814_v44  ;;  %v888_v44 = vld [vmem:[%s1642_s8] sm:$0xff] }
 0x1eb   : > { %v817_v8 = vmul.f32 %v1174_v13, %v815_v45 }
 0x1ec   : > { %v818_v47 = vadd.f32 0.2548296, %v816_v46 }
 0x1ed   : > { %v819_v48 = vadd.f32 0.2548296, %v817_v8 }
 0x1ee   : > { %v820_v49 = vmul.f32 %v1172_v15, %v818_v47  ;;  %v913_v47 = vld [vmem:[%s1645_s11] sm:$0xf] }
 0x1ef   : > { %v821_v51 = vmul.f32 %v1174_v13, %v819_v48  ;;  %v897_v48 = vld [vmem:[%s1643_s9] sm:$0xff] }
 0x1f0   : > { %v830_v23 = vmul.f32 %v1176_v50, %v820_v49 }
 0x1f1   : > { %v831_v29 = vmul.f32 %v1178_v32, %v821_v51 }
 0x1f2   : > { %v832_v52 = vsub.f32 1.0, %v830_v23 }
 0x1f3   : > { %v833_v53 = vsub.f32 1.0, %v831_v29 }
 0x1f4   : > { %v836_v54 = vsub.f32 0.0, %v832_v52 }
 0x1f5   : > { %v837_v56 = vsub.f32 0.0, %v833_v53 }
 0x1f6   : > { %v838_v11 = vsel %vm834_vm12, %v832_v52, %v836_v54  ;;  %v912_v54 = vld [vmem:[%s1644_s10] sm:$0xf] }
 0x1f7   : > { %v839_v55 = vsel %vm835_vm13, %v833_v53, %v837_v56  ;;  %v840_v57 = vadd.f32 1.0, %v838_v11 }
 0x1f8   : > { %v841_v59 = vadd.f32 1.0, %v839_v55 }
 0x1f9   : > { %v1558_v60 = vmul.f32 %v840_v57, %v790_v12 }
 0x1fa   : > { %v1560_v25 = vmul.f32 %v841_v59, %v791_v58 }
 0x1fc   : > { %v844_v61 = vadd.f32 %v1560_v25, %v1558_v60 }
 0x1fe   : > { %845 = vadd.xlane.f32.xlu1 %v844_v61 }
 0x28b   : > { %v846_v63 = vpop.xlane.xlu1 %845 }
 0x28c   : > { %v848_v0 = vmul.f32 0.00390625, %v846_v63 }
 0x28e   : > { %v850_v1 = vmul.f32 %v849_v62, %v848_v0 }
 0x290   : > { %v852_v2 = vsel %vm851_vm14, %v850_v1, 0.0 }
 0x291   : > { %v853_v3 = vrot.slane %v852_v2, 4 }
 0x293   : > { %v854_v4 = vadd.f32 %v853_v3, %v852_v2 }
 0x295   : > { %v855_v5 = vrot.slane %v854_v4, 2 }
 0x297   : > { %v856_v6 = vadd.f32 %v855_v5, %v854_v4 }
 0x299   : > { %v857_v16 = vrot.slane %v856_v6, 1 }
 0x29b   : > { %v858_v14 = vadd.f32 %v857_v16, %v856_v6 }
 0x29d   : > { %v860_v19 = vadd.f32 %v859_v17, %v858_v14 }
 0x29f   : > { %v862_v7 = vmul.f32 0.70710677, %v860_v19  ;;  %v861_v10 = vmul.f32 0.5, %v860_v19 }
 0x2a1   : > { %v863_v22 = vand.u32 2147483647, %v862_v7  ;;  %vm883_vm15 = vcmp.ge.f32.partialorder %v862_v7, 0.0 }
 0x2a3   : > { %v864_v24 = vmul.f32 0.3275911, %v863_v22  ;;  %v877_v28 = vsub.f32 0.0, %v863_v22 }
 0x2a5   : > { %v865_v21 = vadd.f32 1.0, %v864_v24  ;;  %v878_v27 = vmul.f32 %v877_v28, %v863_v22 }
 0x2a7   : > { %1179 = vrcp.f32 %v865_v21  ;;  %v879_v15 = vmul.f32 1.442695, %v878_v27 }
 0x2a9   : > { %1181 = vpow2.f32 %v879_v15 }
 0x2b1   : > { %v1180_v26 = vpop.eup %1179 }
 0x2b2   : > { %v868_v31 = vmul.f32 1.0614054, %v1180_v26 }
 0x2b3   : > { %v1182_v39 = vpop.eup %1181 }
 0x2b4   : > { %v869_v33 = vadd.f32 -1.4531521, %v868_v31 }
 0x2b6   : > { %v870_v34 = vmul.f32 %v1180_v26, %v869_v33 }
 0x2b8   : > { %v871_v13 = vadd.f32 1.4214138, %v870_v34 }
 0x2ba   : > { %v872_v35 = vmul.f32 %v1180_v26, %v871_v13 }
 0x2bc   : > { %v873_v9 = vadd.f32 -0.28449672, %v872_v35 }
 0x2be   : > { %v874_v36 = vmul.f32 %v1180_v26, %v873_v9 }
 0x2c0   : > { %v875_v37 = vadd.f32 0.2548296, %v874_v36 }
 0x2c2   : > { %v876_v38 = vmul.f32 %v1180_v26, %v875_v37 }
 0x2c4   : > { %v881_v18 = vmul.f32 %v1182_v39, %v876_v38 }
 0x2c6   : > { %v882_v40 = vsub.f32 1.0, %v881_v18 }
 0x2c8   : > { %v884_v20 = vsub.f32 0.0, %v882_v40 }
 0x2ca   : > { %v885_v41 = vsel %vm883_vm15, %v882_v40, %v884_v20 }
 0x2cb   : > { %v886_v42 = vadd.f32 1.0, %v885_v41 }
 0x2cd   : > { %v887_v43 = vmul.f32 %v886_v42, %v861_v10 }
 0x2cf   : > { %v892_v45 = vrot.slane %v887_v43, %v1460_v30 }
 0x2d1   : > { %v893_v46 = vmul.f32 %v892_v45, %v888_v44 }
 0x2d3   : > { %v894_v8 = vsel %vm851_vm14, %v893_v46, 0.0 }
 0x2d4   : > { %895 = vadd.xlane.f32.xlu0 %v894_v8 }
 0x2ea   : > { %916 = vperm.xlu0 %1160, %v913_v47  }
 0x361   : > { %v896_v49 = vpop.xlane.xlu0 %895 }
 0x362   : > { %v898_v50 = vadd.f32 %v897_v48, %v896_v49 }
 0x364   : > { %v1085_v51 = vmul.f32 -1.442695, %v898_v50 }
 0x366   : > { %1183 = vpow2.f32 %v1085_v51 }
 0x369   : > { %v917_v56 = vpop.permute.xlu0 %916 }
 0x370   : > { %v1184_v32 = vpop.eup %1183 }
 0x371   : > { %v902_v30 = vadd.f32 1.0, %v1184_v32 }
 0x373   : > { %1185 = vrcp.f32 %v902_v30 }
 0x37d   : > { %v1186_v23 = vpop.eup %1185 }
 0x37e   : > { %907 = vperm.xlu1 %1161, %v1186_v23  }
 0x3fd   : > { %v908_v29 = vpop.permute.xlu1 %907 }
 0x3fe   : > { %v910_v52 = vmul.f32 %v908_v29, %v1558_v60  ;;  %v911_v53 = vmul.f32 %v908_v29, %v1560_v25 }
 0x400   : > { %923 = vmatprep.subr.mxu1 %v911_v53 }
 0x401   : > { %924 = vmatpush1.msra.mxu1 %v910_v52 }
 0x402   : > { %1086 = vmatmul.mubr.msk.f32.vlgmr.msra.gmra.mrb[0].mxu1 %vm919_vm0, %v912_v54 }
 0x4d5   : > { %v989_v11 = vpop.f32.mrb[0].mxu1 }
 0x4d6   : > { %v990_v12 = vadd.f32 %v989_v11, %v917_v56  ;;  %v991_v55 = vpop.f32.mrb[1].mxu1 }
 0x4d7   : > { %v992_v57 = vadd.f32 %v991_v55, %v917_v56 }
 0x4d9   : > { %v996_v58 = vcombine.low %v990_v12, %v992_v57 }
 0x4db   : > { %998 = vst [vmem:[%s406_s19] sm:$0xff] %v996_v58 }
 0x4dc   : > { %1200 = shalt.err (!%p1197_p3)
}
 0x4dd   : > { %s1201_s0 = scalar_lea.hbm %s1592_s29, 128  ;;  %s1205_s26 = scalar_lea.hbm %s1646_s12, 256 }
 0x4de   : > { %p1202_p4 = scmp.ne.s32.totalorder %s1592_s29, %s1201_s0  ;;  %p1206_p9 = scmp.lt.u32.totalorder %s1592_s29, %s1646_s12 }
 0x4df   : > { %p1207_p10 = scmp.lt.u32.totalorder %s1205_s26, %s1201_s0  ;;  %p1209_p12 = scmp.lt.u32.totalorder %s1201_s0, %s1592_s29 }
 0x4e0   : > { %p1203_p7 = pnand %p1202_p4, %p1373_p5 }
 0x4e1   : > { %p1208_p11 = por %p1207_p10, %p1206_p9 }
 0x4e2   : > { %p1204_p8 = pneg %p1203_p7 }
 0x4e3   : > { %p1210_p13 = por %p1209_p12, %p1208_p11 }
 0x4e5   : > { %p1211_p0 = pnand %p1210_p13, %p1204_p8 }
 0x4e7   : > { %1214 = shalt.err (!%p1211_p0)
}
 0x4e8   : > { %1094 = dma.vmem_to_hbm [thread:$0]  (%p1373_p5), %s1594_s20, 128, %s1592_s29, %s1000_s15  }
 0x4e9 PF: > { %p1100_p1 = scmp.ge.s32.totalorder %s1249_s24, 2  ;;  %s1026_s1 = sand.u32 1, %s1237_s21  }
 0x4ea   : > { %s1027_s16 = scalar_lea.sflag [#allocation3], %s1026_s1 }
 0x4eb   : > { %p1097_p2 = pnand %p1100_p1, %p1377_p6 }
 0x4ed   : > { %1232 = dma.done.wait (!%p1097_p2), %s1027_s16, 128  }
 0x4ee   : > { %1234 = vsyncadd (!%p1097_p2), %s1027_s16, 4294967168  ;;  %p22_p3 = scmp.ge.s32.totalorder %s1360_s27, 4   ;;  %s1653_s21 = smov %s1241_s22 }
 0x4ef   : > { %s1654_s22 = smov %s1245_s23  ;;  %s1655_s23 = smov %s1371_s30 }
 0x4f0   : > { %s1656_s24 = smov %s1360_s27  ;;  %24 = sbr.rel (!%p22_p3) target bundleno = 6 (0x6), region = 103 }
 0x4f7   :  { %1032 = vsyncpa [#allocation3], 1 }
 0x4f8   :  { %1034 = vsyncpa [#allocation3 + $0x1], 1 }

</bundles_post_ra>
